<compile_context>
chip_gen: v7x
topology: tpu7x:2x2x1
jax: 0.10.0
libtpu: 0.0.40
codegen_flags: <defaults>
</compile_context>

<pallas_src>
import functools

import jax
import jax.numpy as jnp
from jax.experimental import pallas as pl
from jax.experimental.pallas import tpu as pltpu

_NEG_INF = -1e30  # finite "minus infinity" for masking padded lanes


def _round_up(x, m):
    return (x + m - 1) // m * m


def _pad2(a, rows, cols):
    r, c = a.shape
    return jnp.pad(a, ((0, rows - r), (0, cols - c)))


# ---------------------------------------------------------------------------
# Fused whole-network kernel (small graphs: everything resident in VMEM).
# ---------------------------------------------------------------------------
def _gcn_fused_kernel(x_ref, adj_ref, *rest, assoc, out_dim):
    # rest = (w0, b0, w1, b1, ..., o_ref)
    o_ref = rest[-1]
    wb_refs = rest[:-1]
    num_layers = len(wb_refs) // 2

    adj = adj_ref[...]          # bf16, stays resident for all layers
    h = x_ref[...]              # bf16

    for l in range(num_layers):
        w = wb_refs[2 * l][...]
        b = wb_refs[2 * l + 1][...]
        if assoc[l] == "pre":   # adj @ (h @ W): cheaper when F_in > F_out
            s = jnp.dot(h, w, preferred_element_type=jnp.float32).astype(jnp.bfloat16)
            z = jnp.dot(adj, s, preferred_element_type=jnp.float32)
        else:                   # (adj @ h) @ W: cheaper when F_in <= F_out
            t = jnp.dot(adj, h, preferred_element_type=jnp.float32).astype(jnp.bfloat16)
            z = jnp.dot(t, w, preferred_element_type=jnp.float32)
        z = z + b
        if l < num_layers - 1:
            h = jnp.maximum(z, 0.0).astype(jnp.bfloat16)
        else:
            # log_softmax over dim=1, masking padded lanes so the normalizer
            # only sees the real `out_dim` logits.
            col = jax.lax.broadcasted_iota(jnp.int32, z.shape, 1)
            zm = jnp.where(col < out_dim, z, _NEG_INF)
            m = jnp.max(zm, axis=1, keepdims=True)
            sh = zm - m
            lse = jnp.log(jnp.sum(jnp.exp(sh), axis=1, keepdims=True))
            o_ref[...] = (sh - lse).astype(o_ref.dtype)


def gcn_forward_fused(x, adj, params):
    """Whole GCN forward in one pallas_call (adj + activations stay in VMEM)."""
    n, f_in = x.shape
    out_dim = params[-1][0].shape[1]
    n_p = _round_up(n, 16)
    dims_p = [_round_up(f_in, 128)] + [_round_up(w.shape[1], 128) for (w, _) in params]

    x_p = _pad2(x, n_p, dims_p[0]).astype(jnp.bfloat16)
    adj_p = _pad2(adj, n_p, n_p).astype(jnp.bfloat16)
    flat = []
    for l, (w, b) in enumerate(params):
        flat.append(_pad2(w, dims_p[l], dims_p[l + 1]).astype(jnp.bfloat16))
        flat.append(_pad2(b, 1, dims_p[l + 1]).astype(jnp.float32))
    assoc = tuple("pre" if dims_p[l] > dims_p[l + 1] else "post"
                  for l in range(len(params)))

    kernel = functools.partial(_gcn_fused_kernel, assoc=assoc, out_dim=out_dim)
    out_p = pl.pallas_call(
        kernel,
        out_shape=jax.ShapeDtypeStruct((n_p, dims_p[-1]), jnp.float32),
        in_specs=[pl.BlockSpec(memory_space=pltpu.MemorySpace.VMEM)] * (2 + len(flat)),
        out_specs=pl.BlockSpec(memory_space=pltpu.MemorySpace.VMEM),
        compiler_params=pltpu.CompilerParams(vmem_limit_bytes=48 * 1024 * 1024),
    )(x_p, adj_p, *flat)
    return out_p[:n, :out_dim]


# ---------------------------------------------------------------------------
# Tiled per-layer kernel (large graphs: grid over adj row tiles x k tiles).
# ---------------------------------------------------------------------------
def _gcn_layer_tiled_kernel(adj_ref, x_ref, w_ref, b_ref, o_ref, acc_ref, *,
                            assoc, activation, out_dim):
    k = pl.program_id(1)

    @pl.when(k == 0)
    def _():
        acc_ref[...] = jnp.zeros_like(acc_ref)

    if assoc == "pre":
        # support tile = x_k @ W (small), then contract adj against the narrow dim.
        s = jnp.dot(x_ref[...], w_ref[...],
                    preferred_element_type=jnp.float32).astype(jnp.bfloat16)
        acc_ref[...] += jnp.dot(adj_ref[...], s, preferred_element_type=jnp.float32)
    else:
        acc_ref[...] += jnp.dot(adj_ref[...], x_ref[...],
                                preferred_element_type=jnp.float32)

    @pl.when(k == pl.num_programs(1) - 1)
    def _():
        r = acc_ref[...]
        if assoc == "post":
            r = jnp.dot(r.astype(jnp.bfloat16), w_ref[...],
                        preferred_element_type=jnp.float32)
        r = r + b_ref[...]
        if activation == "relu":
            r = jnp.maximum(r, 0.0)
        elif activation == "log_softmax":
            col = jax.lax.broadcasted_iota(jnp.int32, r.shape, 1)
            r = jnp.where(col < out_dim, r, _NEG_INF)
            m = jnp.max(r, axis=1, keepdims=True)
            sh = r - m
            lse = jnp.log(jnp.sum(jnp.exp(sh), axis=1, keepdims=True))
            r = sh - lse
        o_ref[...] = r.astype(o_ref.dtype)


def gcn_layer_tiled(x, adj, w, b, activation, *, tile=256):
    """One GraphConvolution layer, tiled over adjacency row/contraction tiles."""
    n, f_in = x.shape
    f_out = w.shape[1]
    f_in_p = _round_up(f_in, 128)
    f_out_p = _round_up(f_out, 128)
    tile = min(tile, _round_up(n, 128))
    n_p = _round_up(n, tile)
    assoc = "pre" if f_in_p > f_out_p else "post"

    adj_p = _pad2(adj, n_p, n_p).astype(jnp.bfloat16)
    x_p = _pad2(x, n_p, f_in_p).astype(jnp.bfloat16)
    w_p = _pad2(w, f_in_p, f_out_p).astype(jnp.bfloat16)
    b_p = _pad2(b, 1, f_out_p).astype(jnp.float32)

    grid = (n_p // tile, n_p // tile)
    acc_cols = f_out_p if assoc == "pre" else f_in_p
    out_dtype = jnp.float32 if activation == "log_softmax" else jnp.bfloat16

    kernel = functools.partial(_gcn_layer_tiled_kernel, assoc=assoc,
                               activation=activation, out_dim=f_out)
    out_p = pl.pallas_call(
        kernel,
        out_shape=jax.ShapeDtypeStruct((n_p, f_out_p), out_dtype),
        grid=grid,
        in_specs=[
            pl.BlockSpec((tile, tile), lambda i, k: (i, k)),      # adj tile
            pl.BlockSpec((tile, f_in_p), lambda i, k: (k, 0)),    # features (k rows)
            pl.BlockSpec((f_in_p, f_out_p), lambda i, k: (0, 0)),  # W (resident)
            pl.BlockSpec((1, f_out_p), lambda i, k: (0, 0)),       # bias
        ],
        out_specs=pl.BlockSpec((tile, f_out_p), lambda i, k: (i, 0)),
        scratch_shapes=[pltpu.VMEM((tile, acc_cols), jnp.float32)],
        compiler_params=pltpu.CompilerParams(
            dimension_semantics=("parallel", "arbitrary"),
            vmem_limit_bytes=48 * 1024 * 1024,
        ),
    )(adj_p, x_p, w_p, b_p)
    return out_p[:n, :f_out]


def gcn_forward_tiled(x, adj, params):
    h = x
    for (w, b) in params[:-1]:
        h = gcn_layer_tiled(h, adj, w, b, "relu")
    w, b = params[-1]
    return gcn_layer_tiled(h, adj, w, b, "log_softmax")


# ---------------------------------------------------------------------------
# Parameters, routing, references.
# ---------------------------------------------------------------------------
def init_gcn_params(key, input_dim, hidden_dim, output_dim, num_layers):
    """Parameter init matching GCN.__init__ structure (uniform W and b)."""
    dims = []
    in_d = input_dim
    for _ in range(num_layers - 1):
        dims.append((in_d, hidden_dim))
        in_d = hidden_dim
    dims.append((hidden_dim, output_dim))  # mirrors the module (uses hidden_dim here)

    params = []
    for (fi, fo) in dims:
        key, kw, kb = jax.random.split(key, 3)
        bound = float(1.0 / (fo ** 0.5))
        w = jax.random.uniform(kw, (fi, fo), jnp.float32, -bound, bound)
        b = jax.random.uniform(kb, (1, fo), jnp.float32, -bound, bound)
        params.append((w, b))
    return params


def _fused_vmem_bytes(n, dims):
    n_p = _round_up(n, 16)
    dims_p = [_round_up(d, 128) for d in dims]
    total = n_p * n_p * 2 + n_p * dims_p[0] * 2
    total += sum(dims_p[i] * dims_p[i + 1] * 2 + dims_p[i + 1] * 4
                 for i in range(len(dims_p) - 1))
    total += 2 * n_p * max(dims_p) * 4   # intermediate activations (rough)
    total += n_p * dims_p[-1] * 4        # output
    return total


def gcn_forward(x, adj, params, dropout=0.0):
    """Replicates GCN.forward (inference / eval mode)."""
    del dropout  # F.dropout with training=False is identity
    dims = [x.shape[1]] + [w.shape[1] for (w, _) in params]
    if _fused_vmem_bytes(adj.shape[0], dims) <= 24 * 2**20:
        return gcn_forward_fused(x, adj, params)
    return gcn_forward_tiled(x, adj, params)


def _reference_forward_matched(x, adj, params):
    """Pure-JAX reference mirroring the kernels' bf16/f32 mixed-precision path."""
    dims_p = [_round_up(x.shape[1], 128)] + \
             [_round_up(w.shape[1], 128) for (w, _) in params]
    a = adj.astype(jnp.bfloat16)
    h = x.astype(jnp.bfloat16)
    z = None
    for l, (w, b) in enumerate(params):
        wb = w.astype(jnp.bfloat16)
        if dims_p[l] > dims_p[l + 1]:   # "pre"
            s = jnp.dot(h, wb, preferred_element_type=jnp.float32).astype(jnp.bfloat16)
            z = jnp.dot(a, s, preferred_element_type=jnp.float32)
        else:                           # "post"
            t = jnp.dot(a, h, preferred_element_type=jnp.float32).astype(jnp.bfloat16)
            z = jnp.dot(t, wb, preferred_element_type=jnp.float32)
        z = z + b
        if l < len(params) - 1:
            h = jnp.maximum(z, 0.0).astype(jnp.bfloat16)
    return jax.nn.log_softmax(z, axis=1)


def _reference_forward_f32(x, adj, params):
    """Full-precision reference (original module semantics)."""
    h = x
    for (w, b) in params[:-1]:
        h = jnp.maximum(adj @ (h @ w) + b, 0.0)
    w, b = params[-1]
    return jax.nn.log_softmax(adj @ (h @ w) + b, axis=1)


def _make_norm_adj(key, n):
    a = (jax.random.uniform(key, (n, n)) > 0.7).astype(jnp.float32)
    a = jnp.maximum(a, a.T) + jnp.eye(n, dtype=jnp.float32)
    return a / jnp.sum(a, axis=1, keepdims=True)


if __name__ == "__main__":
    key = jax.random.PRNGKey(0)
    k_x, k_a, k_p, k2_x, k2_a, k2_p = jax.random.split(key, 6)

    # ---- Case 1: module-consistent small shapes -> fully-fused single kernel.
    num_nodes, input_dim, hidden_dim, output_dim, num_layers = 16, 8, 32, 4, 3
    dropout = 0.5

    x = jax.random.normal(k_x, (num_nodes, input_dim), jnp.float32)
    adj = _make_norm_adj(k_a, num_nodes)
    params = init_gcn_params(k_p, input_dim, hidden_dim, output_dim, num_layers)

    out = jax.block_until_ready(gcn_forward(x, adj, params, dropout=dropout))
    assert out.shape == (num_nodes, output_dim)
    ref_m = _reference_forward_matched(x, adj, params)
    assert jnp.allclose(out, ref_m, atol=1e-3, rtol=1e-3), "fused path mismatch (bf16 ref)"
    ref_f = _reference_forward_f32(x, adj, params)
    assert float(jnp.max(jnp.abs(out - ref_f))) < 0.15, "fused path mismatch (f32 ref)"

    # ---- Case 2: larger graph -> tiled per-layer grid path (exercises tiling,
    #      scratch accumulator, both matmul associations, megacore semantics).
    n2, in2, hid2, out2 = 512, 64, 256, 16
    x2 = jax.random.normal(k2_x, (n2, in2), jnp.float32)
    adj2 = _make_norm_adj(k2_a, n2)
    params2 = init_gcn_params(k2_p, in2, hid2, out2, 3)

    out_t = jax.block_until_ready(gcn_forward_tiled(x2, adj2, params2))
    assert out_t.shape == (n2, out2)
    ref2 = _reference_forward_matched(x2, adj2, params2)
    assert jnp.allclose(out_t, ref2, atol=1e-3, rtol=1e-3), "tiled path mismatch (bf16 ref)"

    print("KERNEL_OK")
</pallas_src>

<mosaic_0001>
module attributes {stable_mosaic.version = 11 : i64} {
  func.func @_gcn_fused_kernel(%arg0: memref<16x128xbf16, #tpu.memory_space<vmem>>, %arg1: memref<16x16xbf16, #tpu.memory_space<vmem>>, %arg2: memref<128x128xbf16, #tpu.memory_space<vmem>>, %arg3: memref<1x128xf32, #tpu.memory_space<vmem>>, %arg4: memref<128x128xbf16, #tpu.memory_space<vmem>>, %arg5: memref<1x128xf32, #tpu.memory_space<vmem>>, %arg6: memref<128x128xbf16, #tpu.memory_space<vmem>>, %arg7: memref<1x128xf32, #tpu.memory_space<vmem>>, %arg8: memref<16x128xf32, #tpu.memory_space<vmem>>) attributes {dimension_semantics = [], scalar_prefetch = 0 : i64, scratch_operands = 0 : i64, tpu.core_type = #tpu.core_type<tc>} {
    %c0 = arith.constant 0 : index
    %c0_0 = arith.constant 0 : index
    %0 = vector.load %arg1[%c0, %c0_0] : memref<16x16xbf16, #tpu.memory_space<vmem>>, vector<16x16xbf16>
    %c0_1 = arith.constant 0 : index
    %c0_2 = arith.constant 0 : index
    %1 = vector.load %arg0[%c0_1, %c0_2] : memref<16x128xbf16, #tpu.memory_space<vmem>>, vector<16x128xbf16>
    %c0_3 = arith.constant 0 : index
    %c0_4 = arith.constant 0 : index
    %2 = vector.load %arg2[%c0_3, %c0_4] : memref<128x128xbf16, #tpu.memory_space<vmem>>, vector<128x128xbf16>
    %c0_5 = arith.constant 0 : index
    %c0_6 = arith.constant 0 : index
    %3 = vector.load %arg3[%c0_5, %c0_6] : memref<1x128xf32, #tpu.memory_space<vmem>>, vector<1x128xf32>
    %cst = arith.constant dense<0.000000e+00> : vector<16x128xf32>
    %4 = tpu.matmul %0, %1, %cst {dimension_numbers = #tpu.dot_dimension_numbers<[1], [0], [0], [1], [0, 0, 1, 1], [], []>} : vector<16x16xbf16>, vector<16x128xbf16>, vector<16x128xf32> -> vector<16x128xf32>
    %5 = arith.truncf %4 : vector<16x128xf32> to vector<16x128xbf16>
    %cst_7 = arith.constant dense<0.000000e+00> : vector<16x128xf32>
    %6 = tpu.matmul %5, %2, %cst_7 {dimension_numbers = #tpu.dot_dimension_numbers<[1], [0], [0], [1], [0, 0, 1, 1], [], []>} : vector<16x128xbf16>, vector<128x128xbf16>, vector<16x128xf32> -> vector<16x128xf32>
    %7 = vector.broadcast %3 : vector<1x128xf32> to vector<16x128xf32>
    %8 = arith.addf %6, %7 : vector<16x128xf32>
    %cst_8 = arith.constant 0.000000e+00 : f32
    %9 = vector.broadcast %cst_8 : f32 to vector<16x128xf32>
    %10 = arith.maximumf %8, %9 : vector<16x128xf32>
    %11 = arith.truncf %10 : vector<16x128xf32> to vector<16x128xbf16>
    %c0_9 = arith.constant 0 : index
    %c0_10 = arith.constant 0 : index
    %12 = vector.load %arg4[%c0_9, %c0_10] : memref<128x128xbf16, #tpu.memory_space<vmem>>, vector<128x128xbf16>
    %c0_11 = arith.constant 0 : index
    %c0_12 = arith.constant 0 : index
    %13 = vector.load %arg5[%c0_11, %c0_12] : memref<1x128xf32, #tpu.memory_space<vmem>>, vector<1x128xf32>
    %cst_13 = arith.constant dense<0.000000e+00> : vector<16x128xf32>
    %14 = tpu.matmul %0, %11, %cst_13 {dimension_numbers = #tpu.dot_dimension_numbers<[1], [0], [0], [1], [0, 0, 1, 1], [], []>} : vector<16x16xbf16>, vector<16x128xbf16>, vector<16x128xf32> -> vector<16x128xf32>
    %15 = arith.truncf %14 : vector<16x128xf32> to vector<16x128xbf16>
    %cst_14 = arith.constant dense<0.000000e+00> : vector<16x128xf32>
    %16 = tpu.matmul %15, %12, %cst_14 {dimension_numbers = #tpu.dot_dimension_numbers<[1], [0], [0], [1], [0, 0, 1, 1], [], []>} : vector<16x128xbf16>, vector<128x128xbf16>, vector<16x128xf32> -> vector<16x128xf32>
    %17 = vector.broadcast %13 : vector<1x128xf32> to vector<16x128xf32>
    %18 = arith.addf %16, %17 : vector<16x128xf32>
    %cst_15 = arith.constant 0.000000e+00 : f32
    %19 = vector.broadcast %cst_15 : f32 to vector<16x128xf32>
    %20 = arith.maximumf %18, %19 : vector<16x128xf32>
    %21 = arith.truncf %20 : vector<16x128xf32> to vector<16x128xbf16>
    %c0_16 = arith.constant 0 : index
    %c0_17 = arith.constant 0 : index
    %22 = vector.load %arg6[%c0_16, %c0_17] : memref<128x128xbf16, #tpu.memory_space<vmem>>, vector<128x128xbf16>
    %c0_18 = arith.constant 0 : index
    %c0_19 = arith.constant 0 : index
    %23 = vector.load %arg7[%c0_18, %c0_19] : memref<1x128xf32, #tpu.memory_space<vmem>>, vector<1x128xf32>
    %cst_20 = arith.constant dense<0.000000e+00> : vector<16x128xf32>
    %24 = tpu.matmul %0, %21, %cst_20 {dimension_numbers = #tpu.dot_dimension_numbers<[1], [0], [0], [1], [0, 0, 1, 1], [], []>} : vector<16x16xbf16>, vector<16x128xbf16>, vector<16x128xf32> -> vector<16x128xf32>
    %25 = arith.truncf %24 : vector<16x128xf32> to vector<16x128xbf16>
    %cst_21 = arith.constant dense<0.000000e+00> : vector<16x128xf32>
    %26 = tpu.matmul %25, %22, %cst_21 {dimension_numbers = #tpu.dot_dimension_numbers<[1], [0], [0], [1], [0, 0, 1, 1], [], []>} : vector<16x128xbf16>, vector<128x128xbf16>, vector<16x128xf32> -> vector<16x128xf32>
    %27 = vector.broadcast %23 : vector<1x128xf32> to vector<16x128xf32>
    %28 = arith.addf %26, %27 : vector<16x128xf32>
    %29 = tpu.iota {dimensions = array<i32: 1>} : vector<16x128xi32>
    %c4_i32 = arith.constant 4 : i32
    %30 = vector.broadcast %c4_i32 : i32 to vector<16x128xi32>
    %31 = arith.cmpi slt, %29, %30 : vector<16x128xi32>
    %cst_22 = arith.constant -1.000000e+30 : f32
    %32 = vector.broadcast %cst_22 : f32 to vector<16x128xf32>
    %33 = arith.select %31, %28, %32 : vector<16x128xi1>, vector<16x128xf32>
    %cst_23 = arith.constant dense<0xFF800000> : vector<16xf32>
    %34 = vector.multi_reduction <maximumf>, %33, %cst_23 [1] : vector<16x128xf32> to vector<16xf32>
    %35 = vector.shape_cast %34 : vector<16xf32> to vector<16x1xf32>
    %36 = vector.broadcast %35 : vector<16x1xf32> to vector<16x128xf32>
    %37 = arith.subf %33, %36 : vector<16x128xf32>
    %38 = math.exp %37 : vector<16x128xf32>
    %cst_24 = arith.constant dense<0.000000e+00> : vector<16xf32>
    %39 = vector.multi_reduction <add>, %38, %cst_24 [1] : vector<16x128xf32> to vector<16xf32>
    %40 = vector.shape_cast %39 : vector<16xf32> to vector<16x1xf32>
    %41 = math.log %40 : vector<16x1xf32>
    %42 = vector.broadcast %41 : vector<16x1xf32> to vector<16x128xf32>
    %43 = arith.subf %37, %42 : vector<16x128xf32>
    %c0_25 = arith.constant 0 : index
    %c0_26 = arith.constant 0 : index
    %44 = vector.load %arg8[%c0_25, %c0_26] : memref<16x128xf32, #tpu.memory_space<vmem>>, vector<16x128xf32>
    tpu.vector_store %arg8[%c0_25, %c0_26], %43 {strides = array<i32>} : memref<16x128xf32, #tpu.memory_space<vmem>>, vector<16x128xf32>,
    return
  }
}

</mosaic_0001>

<bundles_post_ra>
// kernel: tpu_custom_call.1
= control target key start
LH: loop header
LB: loop body
LE: loop exit
PB: predicated region body
PF: predicated region fallthrough
CT: control target
= control target key end

     0   :  { %13 = vsyncpa [#allocation3], 0  ;;  %s1175_s0 = inlined_call_operand.hbm [shape: bf16[16,128], index: 0, kind: input, shape index: {}]   ;;  %s1176_s1 = inlined_call_operand.hbm [shape: bf16[16,16], index: 1, kind: input, shape index: {}]   ;;  %s1177_s2 = inlined_call_operand.hbm [shape: bf16[128,128], index: 2, kind: input, shape index: {}]   ;;  %s1178_s3 = inlined_call_operand.vmem [shape: f32[1,128], index: 3, kind: input, shape index: {}]   ;;  %s1179_s4 = inlined_call_operand.hbm [shape: bf16[128,128], index: 4, kind: input, shape index: {}]   ;;  %s1180_s5 = inlined_call_operand.vmem [shape: f32[1,128], index: 5, kind: input, shape index: {}]   ;;  %s1181_s6 = inlined_call_operand.hbm [shape: bf16[128,128], index: 6, kind: input, shape index: {}]   ;;  %s1182_s7 = inlined_call_operand.vmem [shape: f32[1,128], index: 7, kind: input, shape index: {}]   ;;  %s1183_s8 = inlined_call_operand.hbm [shape: f32[16,128], index: 8, kind: output, shape index: {}]  }
   0x1   :  { %14 = vsyncpa [#allocation6], 0 }
   0x2   :  { %15 = vsyncpa [#allocation9], 0 }
   0x3   :  { %16 = vsyncpa [#allocation4], 0  ;;  %s961_s27 = smov [#allocation5]   ;;  %s962_s29 = smov [#allocation8]  }
   0x4   :  { %s34_s28 = sshll.u32 %s961_s27, 4  ;;  %s60_s30 = sshll.u32 %s962_s29, 4  ;;  %s35_s28 = int_to_ptr.vmem [resolvable:$true] %s34_s28  ;;  %s1018_s30 = int_to_ptr.vmem [resolvable:$true] %s60_s30 }
   0x5   :  { %s821_s11 = scalar_lea.hbm %s1176_s1, 128 }
   0x6   :  { %p822_p0 = scmp.ne.s32.totalorder %s1176_s1, %s821_s11  ;;  %p825_p1 = scmp.lt.u32.totalorder %s821_s11, %s1176_s1 }
   0x8   :  { %p827_p2 = pnand %p825_p1, %p822_p0 }
   0xa   :  { %830 = shalt.err (!%p827_p2)
}
   0xb   :  { %s831_s16 = scalar_lea.vmem %s35_s28, 128  ;;  %p836_p4 = scmp.lt.s32.totalorder %s35_s28, %s35_s28 }
   0xc   :  { %p832_p3 = scmp.ne.s32.totalorder %s35_s28, %s831_s16  ;;  %p837_p5 = scmp.lt.s32.totalorder %s831_s16, %s831_s16 }
   0xe   :  { %p838_p6 = por %p837_p5, %p836_p4 }
  0x10   :  { %p839_p7 = pnand %p838_p6, %p832_p3 }
  0x12   :  { %842 = shalt.err (!%p839_p7)
}
  0x13   :  { %s963_s17 = smov 64   ;;  %s964_s18 = smov 4  }
  0x14   :  { %40 = dma.hbm_to_vmem [thread:$0]  %s1176_s1, 128, %s35_s28, [#allocation6], %s963_s17, %s963_s17, %s964_s18  }
  0x15   :  { %s843_s23 = scalar_lea.hbm %s1179_s4, 1024 }
  0x16   :  { %p844_p8 = scmp.ne.s32.totalorder %s1179_s4, %s843_s23  ;;  %p847_p9 = scmp.lt.u32.totalorder %s843_s23, %s1179_s4 }
  0x18   :  { %p849_p10 = pnand %p847_p9, %p844_p8 }
  0x1a   :  { %852 = shalt.err (!%p849_p10)
}
  0x1b   :  { %s853_s29 = scalar_lea.vmem %s1018_s30, 1024  ;;  %p858_p12 = scmp.lt.s32.totalorder %s1018_s30, %s1018_s30 }
  0x1c   :  { %p854_p11 = scmp.ne.s32.totalorder %s1018_s30, %s853_s29  ;;  %p859_p13 = scmp.lt.s32.totalorder %s853_s29, %s853_s29 }
  0x1e   :  { %p860_p0 = por %p859_p13, %p858_p12 }
  0x20   :  { %p861_p1 = pnand %p860_p0, %p854_p11 }
  0x22   :  { %864 = shalt.err (!%p861_p1)
}
  0x23   :  { %66 = dma.hbm_to_vmem [thread:$0]  %s1179_s4, 1024, %s1018_s30, [#allocation9], %s963_s17, %s963_s17, %s964_s18  }
  0x24   :  { %s965_s9 = smov [#allocation2]   ;;  %s966_s11 = smov [#allocation7]  }
  0x25   :  { %s22_s10 = sshll.u32 %s965_s9, 4  ;;  %s46_s12 = sshll.u32 %s966_s11, 4  ;;  %s23_s10 = int_to_ptr.vmem [resolvable:$true] %s22_s10  ;;  %s1055_s12 = int_to_ptr.vmem [resolvable:$true] %s46_s12 }
  0x26   :  { %s865_s15 = scalar_lea.hbm %s1175_s0, 128 }
  0x27   :  { %p866_p2 = scmp.ne.s32.totalorder %s1175_s0, %s865_s15  ;;  %p869_p3 = scmp.lt.u32.totalorder %s865_s15, %s1175_s0 }
  0x29   :  { %p871_p4 = pnand %p869_p3, %p866_p2 }
  0x2b   :  { %874 = shalt.err (!%p871_p4)
}
  0x2c   :  { %s875_s4 = scalar_lea.vmem %s23_s10, 128  ;;  %p880_p6 = scmp.lt.s32.totalorder %s23_s10, %s23_s10 }
  0x2d   :  { %p876_p5 = scmp.ne.s32.totalorder %s23_s10, %s875_s4  ;;  %p881_p7 = scmp.lt.s32.totalorder %s875_s4, %s875_s4 }
  0x2f   :  { %p882_p8 = por %p881_p7, %p880_p6 }
  0x31   :  { %p883_p9 = pnand %p882_p8, %p876_p5 }
  0x33   :  { %886 = shalt.err (!%p883_p9)
}
  0x34   :  { %28 = dma.hbm_to_vmem [thread:$0]  %s1175_s0, 128, %s23_s10, [#allocation3], %s963_s17, %s963_s17, %s964_s18  }
  0x35   :  { %s887_s25 = scalar_lea.hbm %s1177_s2, 1024 }
  0x36   :  { %p888_p10 = scmp.ne.s32.totalorder %s1177_s2, %s887_s25  ;;  %p891_p11 = scmp.lt.u32.totalorder %s887_s25, %s1177_s2 }
  0x38   :  { %p893_p12 = pnand %p891_p11, %p888_p10 }
  0x3a   :  { %896 = shalt.err (!%p893_p12)
}
  0x3b   :  { %s897_s28 = scalar_lea.vmem %s1055_s12, 1024  ;;  %p902_p0 = scmp.lt.s32.totalorder %s1055_s12, %s1055_s12 }
  0x3c   :  { %p898_p13 = scmp.ne.s32.totalorder %s1055_s12, %s897_s28  ;;  %p903_p1 = scmp.lt.s32.totalorder %s897_s28, %s897_s28 }
  0x3e   :  { %p904_p2 = por %p903_p1, %p902_p0 }
  0x40   :  { %p905_p3 = pnand %p904_p2, %p898_p13 }
  0x42   :  { %908 = shalt.err (!%p905_p3)
}
  0x43   :  { %52 = dma.hbm_to_vmem [thread:$0]  %s1177_s2, 1024, %s1055_s12, [#allocation6], %s963_s17, %s963_s17, %s964_s18  }
  0x44   :  { %s967_s10 = smov [#allocation10]   ;;  %s909_s15 = scalar_lea.hbm %s1181_s6, 1024 }
  0x45   :  { %s74_s11 = sshll.u32 %s967_s10, 4  ;;  %p910_p4 = scmp.ne.s32.totalorder %s1181_s6, %s909_s15  ;;  %s75_s11 = int_to_ptr.vmem [resolvable:$true] %s74_s11 }
  0x46   :  { %p913_p5 = scmp.lt.u32.totalorder %s909_s15, %s1181_s6 }
  0x48   :  { %p915_p6 = pnand %p913_p5, %p910_p4 }
  0x4a   :  { %918 = shalt.err (!%p915_p6)
}
  0x4b   :  { %s919_s4 = scalar_lea.vmem %s75_s11, 1024  ;;  %p924_p8 = scmp.lt.s32.totalorder %s75_s11, %s75_s11 }
  0x4c   :  { %p920_p7 = scmp.ne.s32.totalorder %s75_s11, %s919_s4  ;;  %p925_p9 = scmp.lt.s32.totalorder %s919_s4, %s919_s4 }
  0x4e   :  { %p926_p10 = por %p925_p9, %p924_p8 }
  0x50   :  { %p927_p11 = pnand %p926_p10, %p920_p7 }
  0x52   :  { %930 = shalt.err (!%p927_p11)
}
  0x53   :  { %80 = dma.hbm_to_vmem [thread:$0]  %s1181_s6, 1024, %s75_s11, [#allocation9], %s963_s17, %s963_s17, %s964_s18  }
  0x54   :  { %953 = dma.done.wait [#allocation3], 128  }
  0x55   :  { %954 = vsyncadd [#allocation3], 4294967168 }
  0x56   :  { %955 = dma.done.wait [#allocation6], 1152  }
  0x57   :  { %956 = vsyncadd [#allocation6], 4294966144 }
  0x58   :  { %957 = dma.done.wait [#allocation9], 2048  }
  0x59   :  { %958 = vsyncadd [#allocation9], 4294965248  ;;  %v968_v0 = vmov 0.0   ;;  %vm969_vm0 = vmmov 0   ;;  %v787_v1 = vld [vmem:[#allocation2] sm:$0xff]   ;;  %v1113_v2 = vld [vmem:[#allocation5] sm:$0xff]   ;;  %v586_v62 = vlaneseq }
  0x5a   :  { %697 = vmatprep.subr.bf16.mxu0 %v968_v0  ;;  %699 = vmatprep.mubr.msk.bf16.mxu0 %vm969_vm0, %v968_v0  ;;  %vm131_vm1 = vcmask 130048   ;;  %v789_v3 = vld [vmem:[#allocation7] sm:$0xff]   ;;  %v790_v4 = vld [vmem:[#allocation7 + $0x8] sm:$0xff]   ;;  %v791_v5 = vld [vmem:[#allocation7 + $0x10] sm:$0xff]  }
  0x5b   :  { %703 = vmatprep.subr.bf16.mxu1 %v968_v0  ;;  %719 = vmatprep.mubr.msk.bf16.mxu1 %vm969_vm0, %v968_v0  ;;  %v792_v6 = vld [vmem:[#allocation7 + $0x18] sm:$0xff]   ;;  %v793_v7 = vld [vmem:[#allocation7 + $0x20] sm:$0xff]   ;;  %v794_v8 = vld [vmem:[#allocation7 + $0x28] sm:$0xff]   ;;  %v587_v63 = vand.u32 127, %v586_v62 }
  0x5c   :  { %698 = vmatpush3.bf16.msra.mxu0 %v787_v1  ;;  %704 = vmatpush3.bf16.msra.mxu1 %v789_v3  ;;  %v795_v9 = vld [vmem:[#allocation7 + $0x30] sm:$0xff]   ;;  %v796_v10 = vld [vmem:[#allocation7 + $0x38] sm:$0xff]   ;;  %v797_v26 = vld [vmem:[#allocation8] sm:$0xff]  }
  0x5d   :  { %723 = vmatprep.subr.bf16.mxu0 %v968_v0  ;;  %705 = vmatprep.subr.bf16.mxu1 %v968_v0  ;;  %v635_v16 = vld [vmem:[%s1178_s3] ss:$0 sm:$0xff]  ;;  %v798_v27 = vld [vmem:[#allocation8 + $0x8] sm:$0xff]   ;;  %v800_v29 = vld [vmem:[#allocation8 + $0x18] sm:$0xff]   ;;  %vm588_vm2 = vcmp.lt.s32.totalorder %v587_v63, 4 }
  0x5e   :  { %v799_v28 = vld [vmem:[#allocation8 + $0x10] sm:$0xff]   ;;  %v801_v30 = vld [vmem:[#allocation8 + $0x20] sm:$0xff]   ;;  %v802_v31 = vld [vmem:[#allocation8 + $0x28] sm:$0xff]  }
  0x5f   :  { %700 = vmatmul.mubr.msk.bf16.vlgmr.msra.gmra.mrb[0].mxu0 %vm131_vm1, %v1113_v2  ;;  %v803_v32 = vld [vmem:[#allocation8 + $0x30] sm:$0xff]   ;;  %v804_v33 = vld [vmem:[#allocation8 + $0x38] sm:$0xff]   ;;  %v805_v39 = vld [vmem:[#allocation10] sm:$0xff]  }
  0x60   :  { %725 = vmatprep.mubr.msk.bf16.mxu0 %vm969_vm0, %v968_v0  ;;  %706 = vmatpush3.bf16.msra.mxu1 %v790_v4  ;;  %v806_v40 = vld [vmem:[#allocation10 + $0x8] sm:$0xff]   ;;  %v807_v41 = vld [vmem:[#allocation10 + $0x10] sm:$0xff]   ;;  %v808_v42 = vld [vmem:[#allocation10 + $0x18] sm:$0xff]  }
  0x61   :  { %707 = vmatprep.subr.bf16.mxu1 %v968_v0  ;;  %v809_v43 = vld [vmem:[#allocation10 + $0x20] sm:$0xff]   ;;  %v810_v44 = vld [vmem:[#allocation10 + $0x28] sm:$0xff]   ;;  %v811_v45 = vld [vmem:[#allocation10 + $0x30] sm:$0xff]  }
  0x62   :  { %v645_v46 = vld [vmem:[%s1180_s5] ss:$0 sm:$0xff]  ;;  %v812_v56 = vld [vmem:[#allocation10 + $0x38] sm:$0xff]  }
  0x64   :  { %708 = vmatpush3.bf16.msra.mxu1 %v791_v5 }
  0x65   :  { %709 = vmatprep.subr.bf16.mxu1 %v968_v0 }
  0x68   :  { %710 = vmatpush3.bf16.msra.mxu1 %v792_v6 }
  0x69   :  { %711 = vmatprep.subr.bf16.mxu1 %v968_v0 }
  0x6c   :  { %712 = vmatpush3.bf16.msra.mxu1 %v793_v7 }
  0x6d   :  { %713 = vmatprep.subr.bf16.mxu1 %v968_v0 }
  0x70   :  { %714 = vmatpush3.bf16.msra.mxu1 %v794_v8 }
  0x71   :  { %715 = vmatprep.subr.bf16.mxu1 %v968_v0 }
  0x74   :  { %716 = vmatpush3.bf16.msra.mxu1 %v795_v9 }
  0x75   :  { %717 = vmatprep.subr.bf16.mxu1 %v968_v0 }
  0x78   :  { %718 = vmatpush3.bf16.msra.mxu1 %v796_v10 }
  0x79   :  { %755 = vmatprep.subr.bf16.mxu1 %v968_v0 }
 0x132   :  { %v169_v11 = vpop.f32.mrb[0].mxu0 }
 0x133   :  { %v701_v12 = vpop.f32.mrb[1].mxu0 }
 0x134   :  { %v172_v13 = vpop.f32.mrb[2].mxu0 }
 0x135   :  { %v176_v14 = vpack.c.bf16 %v172_v13, %v169_v11  ;;  %v702_v15 = vpop.f32.mrb[3].mxu0 }
 0x137   :  { %720 = vmatmul.mubr.bf16.vlgmr.msra.gmra.mrb[0].mxu1 %v176_v14 }
 0x138   :  { %771 = vmatprep.mubr.msk.bf16.mxu1 %vm969_vm0, %v968_v0  ;;  %756 = vmatpush3.bf16.msra.mxu1 %v805_v39 }
 0x139   :  { %757 = vmatprep.subr.bf16.mxu1 %v968_v0 }
 0x13c   :  { %758 = vmatpush3.bf16.msra.mxu1 %v806_v40 }
 0x13d   :  { %759 = vmatprep.subr.bf16.mxu1 %v968_v0 }
 0x140   :  { %760 = vmatpush3.bf16.msra.mxu1 %v807_v41 }
 0x141   :  { %761 = vmatprep.subr.bf16.mxu1 %v968_v0 }
 0x144   :  { %762 = vmatpush3.bf16.msra.mxu1 %v808_v42 }
 0x145   :  { %763 = vmatprep.subr.bf16.mxu1 %v968_v0 }
 0x148   :  { %764 = vmatpush3.bf16.msra.mxu1 %v809_v43 }
 0x149   :  { %765 = vmatprep.subr.bf16.mxu1 %v968_v0 }
 0x14c   :  { %766 = vmatpush3.bf16.msra.mxu1 %v810_v44 }
 0x14d   :  { %767 = vmatprep.subr.bf16.mxu1 %v968_v0 }
 0x150   :  { %768 = vmatpush3.bf16.msra.mxu1 %v811_v45 }
 0x151   :  { %769 = vmatprep.subr.bf16.mxu1 %v968_v0 }
 0x154   :  { %770 = vmatpush3.bf16.msra.mxu1 %v812_v56 }
 0x20a   :  { %v265_v17 = vpop.f32.mrb[0].mxu1 }
 0x20b   :  { %v266_v18 = vadd.f32 %v635_v16, %v265_v17  ;;  %v721_v19 = vpop.f32.mrb[1].mxu1 }
 0x20c   :  { %v268_v20 = vpop.f32.mrb[2].mxu1 }
 0x20d   :  { %v269_v21 = vadd.f32 %v635_v16, %v268_v20  ;;  %v722_v22 = vpop.f32.mrb[3].mxu1  ;;  %v272_v23 = vmax.f32 %v266_v18, 0.0 }
 0x20f   :  { %v273_v24 = vmax.f32 %v269_v21, 0.0 }
 0x211   :  { %v274_v25 = vpack.c.bf16 %v273_v24, %v272_v23 }
 0x213   :  { %724 = vmatpush3.bf16.msra.mxu0 %v274_v25 }
 0x214   :  { %729 = vmatprep.subr.bf16.mxu0 %v968_v0 }
 0x216   :  { %726 = vmatmul.mubr.msk.bf16.vlgmr.msra.gmra.mrb[4].mxu0 %vm131_vm1, %v1113_v2 }
 0x217   :  { %730 = vmatpush3.bf16.msra.mxu0 %v797_v26  ;;  %745 = vmatprep.mubr.msk.bf16.mxu0 %vm969_vm0, %v968_v0 }
 0x218   :  { %731 = vmatprep.subr.bf16.mxu0 %v968_v0 }
 0x21b   :  { %732 = vmatpush3.bf16.msra.mxu0 %v798_v27 }
 0x21c   :  { %733 = vmatprep.subr.bf16.mxu0 %v968_v0 }
 0x21f   :  { %734 = vmatpush3.bf16.msra.mxu0 %v799_v28 }
 0x220   :  { %735 = vmatprep.subr.bf16.mxu0 %v968_v0 }
 0x223   :  { %736 = vmatpush3.bf16.msra.mxu0 %v800_v29 }
 0x224   :  { %737 = vmatprep.subr.bf16.mxu0 %v968_v0 }
 0x227   :  { %738 = vmatpush3.bf16.msra.mxu0 %v801_v30 }
 0x228   :  { %739 = vmatprep.subr.bf16.mxu0 %v968_v0 }
 0x22b   :  { %740 = vmatpush3.bf16.msra.mxu0 %v802_v31 }
 0x22c   :  { %741 = vmatprep.subr.bf16.mxu0 %v968_v0 }
 0x22f   :  { %742 = vmatpush3.bf16.msra.mxu0 %v803_v32 }
 0x230   :  { %743 = vmatprep.subr.bf16.mxu0 %v968_v0 }
 0x233   :  { %744 = vmatpush3.bf16.msra.mxu0 %v804_v33 }
 0x234   :  { %749 = vmatprep.subr.bf16.mxu0 %v968_v0 }
 0x2e9   :  { %v326_v34 = vpop.f32.mrb[4].mxu0 }
 0x2ea   :  { %v727_v35 = vpop.f32.mrb[5].mxu0 }
 0x2eb   :  { %v329_v36 = vpop.f32.mrb[6].mxu0 }
 0x2ec   :  { %v333_v37 = vpack.c.bf16 %v329_v36, %v326_v34  ;;  %v728_v38 = vpop.f32.mrb[7].mxu0 }
 0x2ee   :  { %746 = vmatmul.mubr.bf16.vlgmr.msra.gmra.mrb[8].mxu0 %v333_v37 }
 0x2ef   :  { %751 = vmatprep.mubr.msk.bf16.mxu0 %vm969_vm0, %v968_v0  ;;  %v655_v0 = vld [vmem:[%s1182_s7] ss:$0 sm:$0xff]  ;;  %s970_s7 = smov [#allocation11]  }
 0x2f0   :  { %s618_s22 = sshll.u32 %s970_s7, 4  ;;  %s619_s22 = int_to_ptr.vmem [resolvable:$true] %s618_s22 }
 0x2f1   :  { %s931_s23 = scalar_lea.vmem %s619_s22, 256  ;;  %p936_p13 = scmp.lt.s32.totalorder %s619_s22, %s619_s22 }
 0x2f2   :  { %p932_p12 = scmp.ne.s32.totalorder %s619_s22, %s931_s23  ;;  %p937_p0 = scmp.lt.s32.totalorder %s931_s23, %s931_s23 }
 0x2f4   :  { %p938_p1 = por %p937_p0, %p936_p13 }
 0x2f6   :  { %p939_p2 = pnand %p938_p1, %p932_p12 }
 0x3c1   :  { %v422_v47 = vpop.f32.mrb[8].mxu0 }
 0x3c2   :  { %v423_v48 = vadd.f32 %v645_v46, %v422_v47  ;;  %v747_v49 = vpop.f32.mrb[9].mxu0 }
 0x3c3   :  { %v425_v50 = vpop.f32.mrb[10].mxu0 }
 0x3c4   :  { %v426_v51 = vadd.f32 %v645_v46, %v425_v50  ;;  %v748_v52 = vpop.f32.mrb[11].mxu0  ;;  %v429_v53 = vmax.f32 %v423_v48, 0.0 }
 0x3c6   :  { %v430_v54 = vmax.f32 %v426_v51, 0.0 }
 0x3c8   :  { %v431_v55 = vpack.c.bf16 %v430_v54, %v429_v53 }
 0x3ca   :  { %750 = vmatpush3.bf16.msra.mxu0 %v431_v55 }
 0x3cd   :  { %752 = vmatmul.mubr.msk.bf16.vlgmr.msra.gmra.mrb[12].mxu0 %vm131_vm1, %v1113_v2 }
 0x4a0   :  { %v483_v57 = vpop.f32.mrb[12].mxu0 }
 0x4a1   :  { %v753_v58 = vpop.f32.mrb[13].mxu0 }
 0x4a2   :  { %v486_v59 = vpop.f32.mrb[14].mxu0 }
 0x4a3   :  { %v490_v60 = vpack.c.bf16 %v486_v59, %v483_v57  ;;  %v754_v61 = vpop.f32.mrb[15].mxu0 }
 0x4a5   :  { %772 = vmatmul.mubr.bf16.vlgmr.msra.gmra.mrb[4].mxu1 %v490_v60 }
 0x578   :  { %v579_v1 = vpop.f32.mrb[4].mxu1 }
 0x579   :  { %v580_v3 = vadd.f32 %v655_v0, %v579_v1  ;;  %v773_v4 = vpop.f32.mrb[5].mxu1 }
 0x57a   :  { %v582_v5 = vpop.f32.mrb[6].mxu1 }
 0x57b   :  { %v583_v2 = vadd.f32 %v655_v0, %v582_v5  ;;  %v774_v6 = vpop.f32.mrb[7].mxu1  ;;  %v589_v7 = vsel %vm588_vm2, %v580_v3, -1e+30 }
 0x57c   :  { %591 = vmax.xlane.f32.xlu0 %v589_v7 }
 0x57d   :  { %v590_v8 = vsel %vm588_vm2, %v583_v2, -1e+30 }
 0x580   :  { %593 = vmax.xlane.f32.xlu0 %v590_v8 }
 0x609   :  { %v592_v9 = vpop.xlane.xlu0 %591 }
 0x60a   :  { %v595_v10 = vsub.f32 %v589_v7, %v592_v9 }
 0x60c   :  { %v597_v11 = vmul.f32 1.442695, %v595_v10 }
 0x60d   :  { %v594_v12 = vpop.xlane.xlu0 %593 }
 0x60e   :  { %v596_v13 = vsub.f32 %v590_v8, %v594_v12  ;;  %813 = vpow2.f32 %v597_v11 }
 0x610   :  { %v599_v14 = vmul.f32 1.442695, %v596_v13 }
 0x612   :  { %815 = vpow2.f32 %v599_v14 }
 0x618   :  { %v814_v15 = vpop.eup %813 }
 0x619   :  { %601 = vadd.xlane.f32.xlu1 %v814_v15 }
 0x61c   :  { %v816_v16 = vpop.eup %815 }
 0x61d   :  { %603 = vadd.xlane.f32.xlu1 %v816_v16 }
 0x6a6   :  { %v602_v17 = vpop.xlane.xlu1 %601 }
 0x6a7   :  { %817 = vlog2.f32 %v602_v17 }
 0x6aa   :  { %v604_v18 = vpop.xlane.xlu1 %603 }
 0x6ab   :  { %819 = vlog2.f32 %v604_v18 }
 0x6b1   :  { %v818_v19 = vpop.eup %817 }
 0x6b2   :  { %v606_v20 = vmul.f32 0.6931472, %v818_v19 }
 0x6b4   :  { %v609_v21 = vsub.f32 %v595_v10, %v606_v20 }
 0x6b5   :  { %v820_v22 = vpop.eup %819 }
 0x6b6   :  { %611 = vst [vmem:[#allocation11] sm:$0xff] %v609_v21  ;;  %v608_v23 = vmul.f32 0.6931472, %v820_v22 }
 0x6b8   :  { %v610_v24 = vsub.f32 %v596_v13, %v608_v23 }
 0x6ba   :  { %612 = vst [vmem:[#allocation11 + $0x8] sm:$0xff] %v610_v24 }
 0x6bb   :  { %942 = shalt.err (!%p939_p2)
}
 0x6bc   :  { %s943_s26 = scalar_lea.hbm %s1183_s8, 256 }
 0x6bd   :  { %p944_p3 = scmp.ne.s32.totalorder %s1183_s8, %s943_s26  ;;  %p947_p4 = scmp.lt.u32.totalorder %s943_s26, %s1183_s8 }
 0x6bf   :  { %p949_p5 = pnand %p947_p4, %p944_p3 }
 0x6c1   :  { %952 = shalt.err (!%p949_p5)
}
 0x6c2   :  { %s971_s0 = smov 128   ;;  %s972_s9 = smov 8  }
 0x6c3   :  { %624 = dma.vmem_to_hbm [thread:$0]  %s619_s22, 256, %s1183_s8, [#allocation4], %s971_s0, %s971_s0, %s972_s9  }
 0x6c4   :  { %959 = dma.done.wait [#allocation4], 256  }
 0x6c5   :  { %960 = vsyncadd [#allocation4], 4294967040 }
 0x6c6   :  { %628 = vsyncpa [#allocation3], 1 }
 0x6c7   :  { %629 = vsyncpa [#allocation6], 1 }
 0x6c8   :  { %630 = vsyncpa [#allocation9], 1 }
 0x6c9   :  { %631 = vsyncpa [#allocation4], 1 }

</bundles_post_ra>
